<compile_context>
chip_gen: v7x
topology: tpu7x:2x2x1
jax: 0.10.0
libtpu: 0.0.40
codegen_flags: <defaults>
</compile_context>

<pallas_src>
import functools

import jax
import jax.numpy as jnp
from jax import lax
from jax.experimental import pallas as pl
from jax.experimental.pallas import tpu as pltpu


def _conv_kernel(x_ref, w_ref, b_ref, o_ref, *, K, stride, TH, Wo, compute_dtype):
    # x_ref: (1, Cin, TH_in, Wp)   halo'd input row tile (NCHW layout)
    # w_ref: (Cout, K*K*Cin)       weights flattened as (kh, kw, ci), ci fastest
    # b_ref: (Cout, 1)             bias (f32)
    # o_ref: (1, Cout, TH*Wo)      lane-dense output tile (rows flattened onto lanes)
    Cin = x_ref.shape[1]

    x = x_ref[0].astype(compute_dtype)            # (Cin, TH_in, Wp)

    # im2col: one (Cin, TH, Wo) slice per tap.  Concatenation is along the
    # leading (untiled) axis -> cheap; a single reshape then flattens (TH, Wo)
    # onto the 128-lane axis.
    taps = []
    for kh in range(K):
        for kw in range(K):
            taps.append(
                lax.slice(
                    x,
                    (0, kh, kw),
                    (Cin, kh + (TH - 1) * stride + 1, kw + (Wo - 1) * stride + 1),
                    (1, stride, stride),
                )
            )
    slab = jnp.concatenate(taps, axis=0)          # (K*K*Cin, TH, Wo)
    slab = slab.reshape(K * K * Cin, TH * Wo)     # RHS with spatial on lanes

    # Single MXU matmul, contraction = K*K*Cin, f32 accumulation.
    acc = jnp.dot(w_ref[...], slab, preferred_element_type=jnp.float32)
    acc = acc + b_ref[...]                        # (Cout, TH*Wo) + (Cout, 1)
    o_ref[0] = acc.astype(o_ref.dtype)


def _choose_row_tile(Ho, Wo, Wp, Cin, Cout, K, stride, itemsize,
                     budget_bytes=4 * 1024 * 1024):
    """Pick TH | Ho with a lane-aligned flattened output (TH*Wo % 128 == 0,
    unless the whole image is one tile) and a bounded per-step VMEM footprint.
    Prefers >= 2 tiles so the pipeline has steps to hide DMA and v7x megacore
    has work to shard."""
    def tile_bytes(th):
        th_in = (th - 1) * stride + K
        return (Cin * th_in * Wp + Cout * th * Wo) * itemsize

    cands = [th for th in range(1, Ho + 1)
             if Ho % th == 0 and (th == Ho or (th * Wo) % 128 == 0)]
    fitting = [th for th in cands if tile_bytes(th) <= budget_bytes]
    multi = [th for th in fitting if th < Ho]
    if multi:
        return max(multi)
    if fitting:
        return max(fitting)
    return min(cands)


def conv_layer_forward(x_nchw, weight_oihw, bias, stride, *, compute_dtype=None):
    """Reproduces ConvLayer.forward: ReflectionPad2d(K//2) -> Conv2d(K, stride)."""
    N, Cin, H, W = x_nchw.shape
    Cout, Cin_w, K, K2 = weight_oihw.shape
    assert Cin_w == Cin and K == K2
    pad = K // 2
    assert pad < H and pad < W, "reflection pad must be smaller than spatial dims"

    if compute_dtype is None:
        compute_dtype = x_nchw.dtype

    # --- glue: reflection pad (NCHW, no transposes) + halo'd row tiles ------
    x_pad = jnp.pad(x_nchw, ((0, 0), (0, 0), (pad, pad), (pad, pad)), mode="reflect")
    Hp, Wp = H + 2 * pad, W + 2 * pad
    Ho = (Hp - K) // stride + 1
    Wo = (Wp - K) // stride + 1

    TH = _choose_row_tile(Ho, Wo, Wp, Cin, Cout, K, stride,
                          jnp.dtype(x_nchw.dtype).itemsize)
    T = Ho // TH
    TH_in = (TH - 1) * stride + K

    # (N, T, Cin, TH_in, Wp): non-overlapping blocks with the halo rows baked
    # in, so BlockSpec auto-pipelining (double buffering) applies directly.
    x_tiles = jnp.stack(
        [lax.slice_in_dim(x_pad, t * TH * stride, t * TH * stride + TH_in, axis=2)
         for t in range(T)],
        axis=1,
    ).reshape(N * T, Cin, TH_in, Wp)

    # Weights flattened to (Cout, K*K*Cin) with (kh, kw, ci) order (ci fastest),
    # matching the tap concatenation order in the kernel.  Cast once so the
    # resident VMEM copy is already in the MXU feed dtype.
    w_flat = jnp.transpose(weight_oihw, (0, 2, 3, 1)).reshape(Cout, K * K * Cin)
    w_flat = w_flat.astype(compute_dtype)
    b_col = bias.astype(jnp.float32).reshape(Cout, 1)

    kernel = functools.partial(
        _conv_kernel, K=K, stride=stride, TH=TH, Wo=Wo, compute_dtype=compute_dtype)

    out_flat = pl.pallas_call(
        kernel,
        out_shape=jax.ShapeDtypeStruct((N, Cout, Ho * Wo), x_nchw.dtype),
        grid_spec=pltpu.PrefetchScalarGridSpec(
            num_scalar_prefetch=0,
            grid=(N, T),
            in_specs=[
                pl.BlockSpec((1, Cin, TH_in, Wp),
                             lambda n, t, _T=T: (n * _T + t, 0, 0, 0)),
                pl.BlockSpec((Cout, K * K * Cin), lambda n, t: (0, 0)),   # resident
                pl.BlockSpec((Cout, 1), lambda n, t: (0, 0)),             # resident
            ],
            out_specs=pl.BlockSpec((1, Cout, TH * Wo), lambda n, t: (n, 0, t)),
        ),
        compiler_params=pltpu.CompilerParams(
            dimension_semantics=("parallel", "parallel"),
            vmem_limit_bytes=32 * 1024 * 1024,   # explicit budget, safe on v5e/v6e/v7x
        ),
    )(x_tiles, w_flat, b_col)

    # Free, contiguous reshape: (N, Cout, Ho*Wo) -> NCHW.  No transpose needed.
    return out_flat.reshape(N, Cout, Ho, Wo)


def init_conv_params(key, in_channels, out_channels, kernel_size):
    # Deterministic init mimicking torch.nn.Conv2d default (uniform +/- 1/sqrt(fan_in)).
    fan_in = in_channels * kernel_size * kernel_size
    bound = 1.0 / (fan_in ** 0.5)
    kw, kb = jax.random.split(key)
    weight = jax.random.uniform(
        kw, (out_channels, in_channels, kernel_size, kernel_size),
        minval=-bound, maxval=bound, dtype=jnp.float32)
    bias = jax.random.uniform(
        kb, (out_channels,), minval=-bound, maxval=bound, dtype=jnp.float32)
    return weight, bias


def _reference(x, weight, bias, stride):
    K = weight.shape[2]
    pad = K // 2
    x_pad = jnp.pad(x, ((0, 0), (0, 0), (pad, pad), (pad, pad)), mode="reflect")
    return lax.conv_general_dilated(
        x_pad, weight, window_strides=(stride, stride), padding="VALID",
        dimension_numbers=("NCHW", "OIHW", "NCHW")) + bias[None, :, None, None]


if __name__ == "__main__":
    key = jax.random.PRNGKey(0)
    k_x1, k_p1, k_x2, k_p2 = jax.random.split(key, 4)

    # Case 1: ConvLayer(4, 8, kernel_size=3, stride=1) on (2, 4, 16, 16) NCHW.
    N, Cin, H, W = 2, 4, 16, 16
    Cout, K, stride = 8, 3, 1
    x = jax.random.normal(k_x1, (N, Cin, H, W), dtype=jnp.float32)
    weight, bias = init_conv_params(k_p1, Cin, Cout, K)

    out = jax.block_until_ready(conv_layer_forward(x, weight, bias, stride))
    ref = _reference(x, weight, bias, stride)
    assert out.shape == (N, Cout, H, W), out.shape
    assert jnp.allclose(out, ref, atol=1e-4, rtol=1e-4), \
        float(jnp.max(jnp.abs(out - ref)))

    # Case 2: larger receptive field, ConvLayer(3, 16, kernel_size=9, stride=1).
    Cin2, Cout2, K2 = 3, 16, 9
    x2 = jax.random.normal(k_x2, (N, Cin2, H, W), dtype=jnp.float32)
    weight2, bias2 = init_conv_params(k_p2, Cin2, Cout2, K2)

    out2 = jax.block_until_ready(conv_layer_forward(x2, weight2, bias2, 1))
    ref2 = _reference(x2, weight2, bias2, 1)
    assert out2.shape == (N, Cout2, H, W), out2.shape
    assert jnp.allclose(out2, ref2, atol=1e-4, rtol=1e-4), \
        float(jnp.max(jnp.abs(out2 - ref2)))

    # Case 3: bf16 MXU feed (v6e/v7x path), f32 accumulation -> loose tolerance.
    out_bf16 = jax.block_until_ready(
        conv_layer_forward(x, weight, bias, stride, compute_dtype=jnp.bfloat16))
    assert float(jnp.max(jnp.abs(out_bf16 - ref))) < 1e-1

    print("KERNEL_OK")
</pallas_src>

<mosaic_0001>
module attributes {stable_mosaic.version = 11 : i64} {
  func.func @_conv_kernel(%arg0: i32, %arg1: i32, %arg2: memref<1x4x10x18xf32, #tpu.memory_space<vmem>>, %arg3: memref<8x36xf32, #tpu.memory_space<vmem>>, %arg4: memref<8x1xf32, #tpu.memory_space<vmem>>, %arg5: memref<1x8x128xf32, #tpu.memory_space<vmem>>) attributes {dimension_semantics = [#tpu.dimension_semantics<parallel>, #tpu.dimension_semantics<parallel>], iteration_bounds = array<i64: 2, 2>, scalar_prefetch = 0 : i64, scratch_operands = 0 : i64, tpu.core_type = #tpu.core_type<tc>, window_params = [{transform_indices = @transform_0, window_bounds = array<i64: 1, 4, 10, 18>}, {pipeline_mode = #tpu.pipeline_mode<synchronous>, transform_indices = @transform_1, window_bounds = array<i64: 8, 36>}, {pipeline_mode = #tpu.pipeline_mode<synchronous>, transform_indices = @transform_2, window_bounds = array<i64: 8, 1>}, {transform_indices = @transform_3, window_bounds = array<i64: 1, 8, 128>}]} {
    %c0 = arith.constant 0 : index
    %c0_0 = arith.constant 0 : index
    %c0_1 = arith.constant 0 : index
    %c0_2 = arith.constant 0 : index
    %0 = vector.load %arg2[%c0, %c0_0, %c0_1, %c0_2] : memref<1x4x10x18xf32, #tpu.memory_space<vmem>>, vector<1x4x10x18xf32>
    %1 = vector.shape_cast %0 : vector<1x4x10x18xf32> to vector<4x10x18xf32>
    %2 = vector.extract_strided_slice %1 {offsets = [0, 0, 0], sizes = [4, 8, 16], strides = [1, 1, 1]} : vector<4x10x18xf32> to vector<4x8x16xf32>
    %3 = vector.extract_strided_slice %1 {offsets = [0, 0, 1], sizes = [4, 8, 16], strides = [1, 1, 1]} : vector<4x10x18xf32> to vector<4x8x16xf32>
    %4 = vector.extract_strided_slice %1 {offsets = [0, 0, 2], sizes = [4, 8, 16], strides = [1, 1, 1]} : vector<4x10x18xf32> to vector<4x8x16xf32>
    %5 = vector.extract_strided_slice %1 {offsets = [0, 1, 0], sizes = [4, 8, 16], strides = [1, 1, 1]} : vector<4x10x18xf32> to vector<4x8x16xf32>
    %6 = vector.extract_strided_slice %1 {offsets = [0, 1, 1], sizes = [4, 8, 16], strides = [1, 1, 1]} : vector<4x10x18xf32> to vector<4x8x16xf32>
    %7 = vector.extract_strided_slice %1 {offsets = [0, 1, 2], sizes = [4, 8, 16], strides = [1, 1, 1]} : vector<4x10x18xf32> to vector<4x8x16xf32>
    %8 = vector.extract_strided_slice %1 {offsets = [0, 2, 0], sizes = [4, 8, 16], strides = [1, 1, 1]} : vector<4x10x18xf32> to vector<4x8x16xf32>
    %9 = vector.extract_strided_slice %1 {offsets = [0, 2, 1], sizes = [4, 8, 16], strides = [1, 1, 1]} : vector<4x10x18xf32> to vector<4x8x16xf32>
    %10 = vector.extract_strided_slice %1 {offsets = [0, 2, 2], sizes = [4, 8, 16], strides = [1, 1, 1]} : vector<4x10x18xf32> to vector<4x8x16xf32>
    %11 = tpu.concatenate %2, %3, %4, %5, %6, %7, %8, %9, %10 in 0 : vector<4x8x16xf32>, vector<4x8x16xf32>, vector<4x8x16xf32>, vector<4x8x16xf32>, vector<4x8x16xf32>, vector<4x8x16xf32>, vector<4x8x16xf32>, vector<4x8x16xf32>, vector<4x8x16xf32> -> vector<36x8x16xf32>
    %12 = vector.shape_cast %11 : vector<36x8x16xf32> to vector<36x128xf32>
    %c0_3 = arith.constant 0 : index
    %c0_4 = arith.constant 0 : index
    %13 = vector.load %arg3[%c0_3, %c0_4] : memref<8x36xf32, #tpu.memory_space<vmem>>, vector<8x36xf32>
    %cst = arith.constant dense<0.000000e+00> : vector<8x128xf32>
    %14 = tpu.matmul %13, %12, %cst {dimension_numbers = #tpu.dot_dimension_numbers<[1], [0], [0], [1], [0, 0, 1, 1], [], []>} : vector<8x36xf32>, vector<36x128xf32>, vector<8x128xf32> -> vector<8x128xf32>
    %c0_5 = arith.constant 0 : index
    %c0_6 = arith.constant 0 : index
    %15 = vector.load %arg4[%c0_5, %c0_6] : memref<8x1xf32, #tpu.memory_space<vmem>>, vector<8x1xf32>
    %16 = vector.broadcast %15 : vector<8x1xf32> to vector<8x128xf32>
    %17 = arith.addf %14, %16 : vector<8x128xf32>
    %c0_7 = arith.constant 0 : index
    %c0_8 = arith.constant 0 : index
    %c0_9 = arith.constant 0 : index
    %18 = vector.load %arg5[%c0_7, %c0_8, %c0_9] : memref<1x8x128xf32, #tpu.memory_space<vmem>>, vector<1x8x128xf32>
    %19 = vector.shape_cast %18 : vector<1x8x128xf32> to vector<8x128xf32>
    %20 = vector.shape_cast %17 : vector<8x128xf32> to vector<1x8x128xf32>
    tpu.vector_store %arg5[%c0_7, %c0_8, %c0_9], %20 {strides = array<i32>} : memref<1x8x128xf32, #tpu.memory_space<vmem>>, vector<1x8x128xf32>,
    return
  }
  func.func @transform_0(%arg0: i32, %arg1: i32) -> (i32, i32, i32, i32) {
    %c2_i32 = arith.constant 2 : i32
    %0 = arith.muli %arg0, %c2_i32 : i32
    %1 = arith.addi %0, %arg1 : i32
    %c0_i32 = arith.constant 0 : i32
    %c0_i32_0 = arith.constant 0 : i32
    %c0_i32_1 = arith.constant 0 : i32
    %c0_i32_2 = arith.constant 0 : i32
    return %1, %c0_i32, %c0_i32_0, %c0_i32_1 : i32, i32, i32, i32
  }
  func.func @transform_1(%arg0: i32, %arg1: i32) -> (i32, i32) {
    %c0_i32 = arith.constant 0 : i32
    %c0_i32_0 = arith.constant 0 : i32
    %c0_i32_1 = arith.constant 0 : i32
    return %c0_i32, %c0_i32_0 : i32, i32
  }
  func.func @transform_2(%arg0: i32, %arg1: i32) -> (i32, i32) {
    %c0_i32 = arith.constant 0 : i32
    %c0_i32_0 = arith.constant 0 : i32
    %c0_i32_1 = arith.constant 0 : i32
    return %c0_i32, %c0_i32_0 : i32, i32
  }
  func.func @transform_3(%arg0: i32, %arg1: i32) -> (i32, i32, i32) {
    %c0_i32 = arith.constant 0 : i32
    %c0_i32_0 = arith.constant 0 : i32
    return %arg0, %c0_i32, %arg1 : i32, i32, i32
  }
}

</mosaic_0001>

<bundles_post_ra>
// kernel: tpu_custom_call.1
= control target key start
LH: loop header
LB: loop body
LE: loop exit
PB: predicated region body
PF: predicated region fallthrough
CT: control target
= control target key end

     0   :  { %8 = vsyncpa [#allocation3], 0  ;;  %s2142_s0 = inlined_call_operand.vmem [shape: f32[4,4,10,18], index: 0, kind: input, shape index: {}]   ;;  %s2143_s1 = inlined_call_operand.vmem [shape: f32[8,36], index: 1, kind: input, shape index: {}]   ;;  %s2144_s2 = inlined_call_operand.vmem [shape: f32[8,1], index: 2, kind: input, shape index: {}]   ;;  %s2145_s3 = inlined_call_operand.hbm [shape: f32[2,8,256], index: 3, kind: output, shape index: {}]  }
   0x1   :  { %10 = vsyncpa [#allocation3 + $0x1], 0  ;;  %s1621_s12 = smov 0   ;;  %s1623_s13 = smov 0  }
   0x2   :  { %s1625_s14 = smov 0   ;;  %s1627_s15 = smov 0  }
   0x3   :  { %s1629_s16 = smov 0   ;;  %s1631_s17 = smov 0  }
   0x4   :  { %s1633_s18 = smov 0   ;;  %s1635_s19 = smov 0  }
   0x5 LB: > { %s1287_s20 = sadd.s32 4294967295, %s1583_s19   ;;  %s1288_s21 = sadd.s32 4294967294, %s1583_s19   ;;  %s1583_s19 = sphi %s1635_s19, %s16_s19   ;;  %s1579_s18 = sphi %s1633_s18, %s2154_s18   ;;  %s1575_s17 = sphi %s1631_s17, %s2153_s17   ;;  %s1571_s16 = sphi %s1629_s16, %s2152_s16   ;;  %s1567_s15 = sphi %s1627_s15, %s2151_s15   ;;  %s1563_s14 = sphi %s1625_s14, %s2150_s14   ;;  %s1559_s13 = sphi %s1623_s13, %s2149_s13   ;;  %s1555_s12 = sphi %s1621_s12, %s2148_s12  }
   0x6   : > { %s25_s22 = sadd.s32 1, %s1575_s17  ;;  %s28_s23 = sadd.s32 1, %s1579_s18 }
   0x7   : > { %p26_p0 = scmp.ge.s32.totalorder %s25_s22, 2  ;;  %p119_p1 = scmp.ne.s32.totalorder %s1563_s14, %s1559_s13 }
   0x8   : > { %p120_p2 = scmp.eq.s32.totalorder %s1287_s20, 3  ;;  %p125_p5 = scmp.ne.s32.totalorder %s1559_s13, %s1555_s12 }
   0x9   : > { %s2156_s22 = smov (%p26_p0, %s25_s22), 0  ;;  %s2158_s23 = smov (!%p26_p0, %s28_s23), %s1579_s18 }
   0xa   : > { %s105_s24 = ssub.s32 %s1575_s17, %s2156_s22  ;;  %p1672_p3 = por %p120_p2, %p119_p1 }
   0xb   : > { %p30_p4 = scmp.ge.s32.totalorder %s2158_s23, 2  ;;  %p126_p6 = scmp.eq.s32.totalorder %s1288_s21, 3 }
   0xc   : > { %p1293_p7 = scmp.ge.s32.totalorder %s1583_s19, 1  ;;  %p162_p9 = scmp.lt.s32.totalorder %s1583_s19, 5 }
   0xd   : > { %s2160_s23 = smov (%p30_p4, %s2158_s23), 0  ;;  %p1681_p8 = por %p126_p6, %p125_p5 }
   0xe   : > { %s104_s27 = ssub.s32 %s1579_s18, %s2160_s23  ;;  %s109_s28 = sadd.s32 1, %s1563_s14 }
   0xf   : > { %s106_s29 = sor.u32 %s105_s24, %s104_s27  ;;  %p163_p10 = pnand %p1293_p7, %p162_p9 }
  0x10   : > { %p107_p11 = scmp.eq.s32.totalorder %s106_s29, 0  ;;  %s1295_s4 = sshll.u32 (!%p163_p10), %s1571_s16, 1  ;;  %v324_v0 = vlaneseq (!%p163_p10)  ;;  %v1585_v1 = vmov (!%p163_p10), 1983009808   ;;  %vm237_vm0 = vcmask (!%p163_p10), 1046528   ;;  %vm278_vm1 = vcmask (!%p163_p10), 1045504  }
  0x11   : > { %166 = sbr.rel (%p163_p10) target bundleno = 570 (0x23a), region = 32  ;;  %s1694_s5 = sadd.s32 (!%p163_p10), %s1567_s15, %s1295_s4  ;;  %v322_v2 = vunpack.c.l.s4 (!%p163_p10), %v1585_v1  ;;  %vm1598_vm2 = vmmov (!%p163_p10), 0   ;;  %vm1071_vm3 = vcmask (!%p163_p10), 130048   ;;  %vm1077_vm4 = vcmask (!%p163_p10), 261120  }
  0x12   : > { %s1690_s30 = scalar_select %p107_p11, %s1563_s14, %s109_s28  }
  0x13   : > { %p190_p12 = scmp.lt.s32.totalorder (!%p163_p10), %s1694_s5, 3  ;;  %v323_v3 = vunpack.c.0.s8 (!%p163_p10), %v322_v2  ;;  %v1698_v4 = vshrl.u32 (!%p163_p10), %v324_v0, 7  ;;  %s1586_s11 = smov (!%p163_p10), 127   ;;  %vm1083_vm5 = vcmask (!%p163_p10), 392192   ;;  %vm1089_vm6 = vcmask (!%p163_p10), 523264  }
  0x14   : > { %s1587_s15 = smov (!%p163_p10), 126   ;;  %s1589_s16 = smov (!%p163_p10), 32   ;;  %vm1095_vm7 = vcmask (!%p163_p10), 654336   ;;  %vm1101_vm8 = vcmask (!%p163_p10), 785408   ;;  %vm1107_vm9 = vcmask (!%p163_p10), 916480   ;;  %vm1124_vm10 = vcmask (!%p163_p10), 1043456  }
  0x15   : > { %v1710_v8 = vsub.s32 (!%p163_p10), %v323_v3, %v1698_v4  ;;  %s1590_s20 = smov (!%p163_p10), 16   ;;  %s1591_s21 = smov (!%p163_p10), 64   ;;  %vm1120_vm11 = vcmask (!%p163_p10), 293888  }
  0x16   : > { %s1592_s24 = smov (!%p163_p10), 48   ;;  %s1594_s27 = smov (!%p163_p10), 80  }
  0x17   : > { %s1595_s28 = smov (!%p163_p10), 96   ;;  %s1596_s29 = smov (!%p163_p10), 112  }
  0x18   : > { %s191_s6 = scalar_select %p190_p12, %s1694_s5, 3 }
  0x19   : > { %s185_s9 = sand.u32 1, %s1559_s13  }
  0x1a   : > { %s1305_s7 = sshll.u32 %s191_s6, 6 }
  0x1b   : > { %s194_s10 = scalar_lea.vmem %s2142_s0, %s1305_s7 }
  0x1c   : > { %v1703_v5 = vld [vmem:[%s194_s10 + $0x20] sm:$0xff]  ;;  %v1707_v7 = vld [vmem:[%s194_s10 + $0x30] sm:$0xff]  ;;  %v200_v10 = vld [vmem:[%s194_s10 + $0x18] sm:$0x3] }
  0x1d   : > { %v1705_v6 = vld [vmem:[%s194_s10] sm:$0xff]  ;;  %213 = vrot.lane.b32.xlu1 %v1703_v5, %s1586_s11  ;;  %v1716_v9 = vld [vmem:[%s194_s10 + $0x10] sm:$0xff]  ;;  %v247_v12 = vrot.slane %v1707_v7, 1  ;;  %v244_v13 = vrot.slane %v1703_v5, 1  ;;  %v242_v16 = vrot.slane %v200_v10, 1  ;;  %v283_v25 = vrot.slane %v200_v10, 2 }
  0x1e   : > { %209 = vrot.lane.b32.xlu0 %v1705_v6, %s1586_s11  ;;  %v238_v11 = vrot.slane %v1705_v6, 1  ;;  %v319_v14 = vcombine.low %v1705_v6, %v1703_v5  ;;  %v241_v15 = vrot.slane %v1716_v9, 1  ;;  %v198_v17 = vld [vmem:[%s194_s10 + $0x8] sm:$0x3]  ;;  %v204_v18 = vld [vmem:[%s194_s10 + $0x38] sm:$0x3]  ;;  %v335_v19 = vcombine.low %v1716_v9, %v1707_v7 }
  0x1f   : > { %v320_v20 = vcombine.high %v1705_v6, %v1703_v5  ;;  %v239_v21 = vrot.slane %v198_v17, 1  ;;  %v248_v22 = vrot.slane %v204_v18, 1  ;;  %v202_v23 = vld [vmem:[%s194_s10 + $0x28] sm:$0x3]  ;;  %v282_v24 = vrot.slane %v1716_v9, 2  ;;  %s1294_s10 = sshll.u32 %s185_s9, 3 }
  0x20   : > { %v243_v26 = vsel %vm237_vm0, %v241_v15, %v242_v16  ;;  %v245_v27 = vrot.slane %v202_v23, 1  ;;  %v279_v28 = vrot.slane %v1705_v6, 2  ;;  %v280_v29 = vrot.slane %v198_v17, 2 }
  0x21   : > { %215 = vrot.lane.b32.xlu1 %v1707_v7, %s1586_s11  ;;  %v240_v30 = vsel %vm237_vm0, %v238_v11, %v239_v21  ;;  %v249_v31 = vsel %vm237_vm0, %v247_v12, %v248_v22  ;;  %v284_v32 = vsel %vm278_vm1, %v282_v24, %v283_v25  ;;  %v288_v33 = vrot.slane %v1707_v7, 2 }
  0x22   : > { %211 = vrot.lane.b32.xlu0 %v1716_v9, %s1586_s11  ;;  %v503_v34 = vcombine.low %v243_v26, %v249_v31  ;;  %v504_v35 = vcombine.high %v243_v26, %v249_v31  ;;  %v246_v36 = vsel %vm237_vm0, %v244_v13, %v245_v27  ;;  %v281_v37 = vsel %vm278_vm1, %v279_v28, %v280_v29 }
  0x23   : > { %v487_v38 = vcombine.low %v240_v30, %v246_v36  ;;  %v488_v39 = vcombine.high %v240_v30, %v246_v36  ;;  %v289_v40 = vrot.slane %v204_v18, 2  ;;  %v285_v41 = vrot.slane %v1703_v5, 2 }
  0x24   : > { %v1743_v42 = vrot.slane %v503_v34, %v1710_v8  ;;  %v1746_v43 = vrot.slane %v504_v35, %v1710_v8  ;;  %v286_v44 = vrot.slane %v202_v23, 2  ;;  %v1749_v45 = vrot.slane %v319_v14, %v1710_v8 }
  0x25   : > { %223 = vrot.lane.b32.xlu1 %v1716_v9, %s1587_s15  ;;  %v1756_v46 = vrot.slane %v487_v38, %v1710_v8  ;;  %v1759_v47 = vrot.slane %v488_v39, %v1710_v8  ;;  %v290_v48 = vsel %vm278_vm1, %v288_v33, %v289_v40  ;;  %v1764_v52 = vrot.slane %v335_v19, %v1710_v8 }
  0x26   : > { %221 = vrot.lane.b32.xlu0 %v1705_v6, %s1587_s15  ;;  %v743_v49 = vcombine.low %v284_v32, %v290_v48  ;;  %v744_v50 = vcombine.high %v284_v32, %v290_v48  ;;  %v287_v51 = vsel %vm278_vm1, %v285_v41, %v286_v44  ;;  %v1779_v59 = vrot.slane %v320_v20, %v1710_v8 }
  0x27   : > { %v727_v53 = vcombine.low %v281_v37, %v287_v51  ;;  %v728_v54 = vcombine.high %v281_v37, %v287_v51  ;;  %v552_v55 = vcombine.high %v1756_v46, %v1743_v42  ;;  %v551_v56 = vcombine.low %v1756_v46, %v1743_v42 }
  0x28   : > { %v384_v57 = vcombine.high %v1749_v45, %v1764_v52  ;;  %v383_v58 = vcombine.low %v1749_v45, %v1764_v52  ;;  %v336_v60 = vcombine.high %v1716_v9, %v1707_v7  ;;  %v567_v61 = vcombine.low %v1759_v47, %v1746_v43 }
  0x29   : > { %227 = vrot.lane.b32.xlu1 %v1707_v7, %s1587_s15  ;;  %v568_v62 = vcombine.high %v1759_v47, %v1746_v43  ;;  %v1803_v2 = vrot.slane %v743_v49, %v1710_v8  ;;  %v1806_v3 = vrot.slane %v744_v50, %v1710_v8  ;;  %v1812_v6 = vrot.slane %v728_v54, %v1710_v8 }
  0x2a   : > { %225 = vrot.lane.b32.xlu0 %v1703_v5, %s1587_s15  ;;  %v1790_v63 = vrot.slane %v336_v60, %v1710_v8  ;;  %v1809_v5 = vrot.slane %v727_v53, %v1710_v8  ;;  %v1588_v12 = vmov 1934713408  }
  0x2b   : > { %v807_v10 = vcombine.low %v1812_v6, %v1806_v3  ;;  %v808_v11 = vcombine.high %v1812_v6, %v1806_v3  ;;  %v386_v13 = vunpack.c.l.s4 %v1588_v12 }
  0x2c   : > { %v399_v0 = vcombine.low %v1779_v59, %v1790_v63  ;;  %v400_v1 = vcombine.high %v1779_v59, %v1790_v63  ;;  %v791_v7 = vcombine.low %v1809_v5, %v1803_v2  ;;  %v792_v9 = vcombine.high %v1809_v5, %v1803_v2 }
  0x2d   : > { %256 = vrot.lane.b32.xlu1 %v243_v26, %s1586_s11  ;;  %v387_v16 = vunpack.c.0.s8 %v386_v13 }
  0x2e   : > { %254 = vrot.lane.b32.xlu0 %v240_v30, %s1586_s11 }
  0x2f   : > { %v1831_v23 = vsub.s32 %v387_v16, %v1698_v4 }
  0x31   : > { %260 = vrot.lane.b32.xlu1 %v249_v31, %s1586_s11  ;;  %v398_v40 = vrot.slane %v384_v57, %v1831_v23  ;;  %v407_v52 = vrot.slane %v399_v0, %v1831_v23  ;;  %v575_v0 = vrot.slane %v567_v61, %v1831_v23  ;;  %v414_v42 = vrot.slane %v400_v1, %v1831_v23 }
  0x32   : > { %258 = vrot.lane.b32.xlu0 %v246_v36, %s1586_s11  ;;  %v582_v46 = vrot.slane %v568_v62, %v1831_v23 }
  0x35   : > { %268 = vrot.lane.b32.xlu1 %v243_v26, %s1587_s15 }
  0x36   : > { %266 = vrot.lane.b32.xlu0 %v240_v30, %s1587_s15 }
  0x39   : > { %272 = vrot.lane.b32.xlu1 %v249_v31, %s1587_s15  ;;  %v1838_v31 = vrot.slane %v383_v58, %v1831_v23 }
  0x3a   : > { %270 = vrot.lane.b32.xlu0 %v246_v36, %s1587_s15 }
  0x3d   : > { %297 = vrot.lane.b32.xlu1 %v284_v32, %s1586_s11 }
  0x3e   : > { %295 = vrot.lane.b32.xlu0 %v281_v37, %s1586_s11 }
  0x41   : > { %301 = vrot.lane.b32.xlu1 %v290_v48, %s1586_s11 }
  0x42   : > { %299 = vrot.lane.b32.xlu0 %v287_v51, %s1586_s11  ;;  %s1302_s11 = sshll.u32 %s1694_s5, 7  ;;  %s1600_s5 = smov [#allocation2]  }
  0x45   : > { %309 = vrot.lane.b32.xlu1 %v284_v32, %s1587_s15 }
  0x46   : > { %307 = vrot.lane.b32.xlu0 %v281_v37, %s1587_s15 }
  0x49   : > { %313 = vrot.lane.b32.xlu1 %v290_v48, %s1587_s15 }
  0x4a   : > { %311 = vrot.lane.b32.xlu0 %v287_v51, %s1587_s15  ;;  %s187_s15 = scalar_lea.vmem [#allocation2], %s1294_s10 }
  0x8f   : > { %v214_v14 = vpop.permute.xlu1 %213 }
  0x90   : > { %v210_v15 = vpop.permute.xlu0 %209 }
  0x91   : > { %v351_v17 = vcombine.low %v210_v15, %v214_v14  ;;  %v352_v22 = vcombine.high %v210_v15, %v214_v14  ;;  %v566_v14 = vrot.slane %v552_v55, %v1831_v23  ;;  %v1871_v15 = vrot.slane %v551_v56, %v1831_v23 }
  0x93   : > { %v216_v18 = vpop.permute.xlu1 %215  ;;  %v359_v24 = vrot.slane %v351_v17, %v1710_v8  ;;  %v366_v30 = vrot.slane %v352_v22, %v1710_v8 }
  0x94   : > { %v212_v19 = vpop.permute.xlu0 %211 }
  0x95   : > { %v367_v20 = vcombine.low %v212_v19, %v216_v18  ;;  %v368_v21 = vcombine.high %v212_v19, %v216_v18 }
  0x97   : > { %v375_v25 = vrot.slane %v367_v20, %v1710_v8  ;;  %v382_v26 = vrot.slane %v368_v21, %v1710_v8  ;;  %v224_v27 = vpop.permute.xlu1 %223 }
  0x98   : > { %v222_v28 = vpop.permute.xlu0 %221 }
  0x99   : > { %v415_v29 = vcombine.low %v359_v24, %v375_v25  ;;  %v416_v33 = vcombine.high %v359_v24, %v375_v25  ;;  %v431_v4 = vcombine.low %v366_v30, %v382_v26  ;;  %v432_v53 = vcombine.high %v366_v30, %v382_v26 }
  0x9b   : > { %v1841_v32 = vrot.slane %v415_v29, %v1831_v23  ;;  %v228_v34 = vpop.permute.xlu1 %227  ;;  %v430_v51 = vrot.slane %v416_v33, %v1831_v23  ;;  %v439_v54 = vrot.slane %v431_v4, %v1831_v23  ;;  %v446_v55 = vrot.slane %v432_v53, %v1831_v23 }
  0x9c   : > { %v226_v35 = vpop.permute.xlu0 %225  ;;  %v471_v36 = vcombine.low %v224_v27, %v228_v34  ;;  %v472_v37 = vcombine.high %v224_v27, %v228_v34 }
  0x9d   : > { %v455_v38 = vcombine.low %v222_v28, %v226_v35  ;;  %v456_v39 = vcombine.high %v222_v28, %v226_v35  ;;  %v447_v41 = vcombine.low %v1838_v31, %v1841_v32  ;;  %v449_v61 = vcombine.low %v398_v40, %v430_v51 }
  0x9e   : > { %v479_v44 = vrot.slane %v471_v36, %v1710_v8  ;;  %v486_v48 = vrot.slane %v472_v37, %v1710_v8  ;;  %v448_v21 = vcombine.high %v1838_v31, %v1841_v32  ;;  %v451_v22 = vcombine.low %v407_v52, %v439_v54 }
  0x9f   : > { %v463_v49 = vrot.slane %v455_v38, %v1710_v8  ;;  %v470_v50 = vrot.slane %v456_v39, %v1710_v8  ;;  %v1855_v58 = vpop.permute.xlu1 %256  ;;  %v450_v47 = vcombine.high %v398_v40, %v430_v51  ;;  %v452_v33 = vcombine.high %v407_v52, %v439_v54 }
  0xa0   : > { %v1857_v45 = vpop.permute.xlu0 %254  ;;  %v453_v4 = vcombine.low %v414_v42, %v446_v55 }
  0xa1   : > { %v519_v57 = vcombine.low %v463_v49, %v479_v44  ;;  %v520_v60 = vcombine.high %v463_v49, %v479_v44  ;;  %v535_v12 = vcombine.low %v470_v50, %v486_v48  ;;  %v536_v13 = vcombine.high %v470_v50, %v486_v48 }
  0xa2   : > { %v454_v49 = vcombine.high %v414_v42, %v446_v55 }
  0xa3   : > { %v1878_v16 = vrot.slane %v519_v57, %v1831_v23  ;;  %v534_v17 = vrot.slane %v520_v60, %v1831_v23  ;;  %v543_v18 = vrot.slane %v535_v12, %v1831_v23  ;;  %v1883_v19 = vpop.permute.xlu1 %260  ;;  %v550_v56 = vrot.slane %v536_v13, %v1831_v23 }
  0xa4   : > { %v1885_v20 = vpop.permute.xlu0 %258  ;;  %v607_v1 = vcombine.low %v1855_v58, %v1883_v19  ;;  %v1593_v12 = vmov 0.0|0.0   ;;  %v608_v55 = vcombine.high %v1855_v58, %v1883_v19 }
  0xa5   : > { %v585_v24 = vcombine.low %v534_v17, %v566_v14  ;;  %v584_v25 = vcombine.high %v1878_v16, %v1871_v15  ;;  %v583_v59 = vcombine.low %v1878_v16, %v1871_v15  ;;  %v587_v63 = vcombine.low %v543_v18, %v575_v0  ;;  %1325 = vmatprep.subr.bf16.mxu0 %v1593_v12 }
  0xa6   : > { %v591_v43 = vcombine.low %v1857_v45, %v1885_v20  ;;  %v586_v30 = vcombine.high %v534_v17, %v566_v14  ;;  %v588_v35 = vcombine.high %v543_v18, %v575_v0  ;;  %v589_v36 = vcombine.low %v550_v56, %v582_v46 }
  0xa7   : > { %v1906_v62 = vpop.permute.xlu1 %268  ;;  %v1422_v27 = vpack.i.bf16 %v585_v24, %v449_v61  ;;  %v1417_v28 = vpack.i.bf16 %v584_v25, %v448_v21  ;;  %v1432_v29 = vpack.i.bf16 %v587_v63, %v451_v22  ;;  %v1913_v37 = vrot.slane %v607_v1, %v1710_v8 }
  0xa8   : > { %v1908_v26 = vpop.permute.xlu0 %266  ;;  %v1427_v34 = vpack.i.bf16 %v586_v30, %v450_v47  ;;  %v1916_v38 = vrot.slane %v591_v43, %v1710_v8  ;;  %v1437_v44 = vpack.i.bf16 %v588_v35, %v452_v33  ;;  %v1442_v48 = vpack.i.bf16 %v589_v36, %v453_v4 }
  0xa9   : > { %1423 = vrot.lane.b32.xlu1 %v1422_v27, %s1589_s16  ;;  %1418 = vrot.lane.b32.xlu0 %v1417_v28, %s1590_s20  ;;  %v590_v50 = vcombine.high %v550_v56, %v582_v46  ;;  %v592_v42 = vcombine.high %v1857_v45, %v1885_v20  ;;  %v1947_v20 = vrot.slane %v608_v55, %v1710_v8 }
  0xaa   : > { %v655_v52 = vcombine.low %v1916_v38, %v1913_v37  ;;  %v1960_v4 = vrot.slane %v791_v7, %v1831_v23  ;;  %v656_v36 = vcombine.high %v1916_v38, %v1913_v37 }
  0xab   : > { %v273_v39 = vpop.permute.xlu1 %272  ;;  %v1447_v54 = vpack.i.bf16 %v590_v50, %v454_v49  ;;  %v1950_v43 = vrot.slane %v592_v42, %v1710_v8 }
  0xac   : > { %v271_v40 = vpop.permute.xlu0 %270  ;;  %v639_v51 = vcombine.low %v1906_v62, %v273_v39  ;;  %v1929_v17 = vrot.slane %v655_v52, %v1831_v23  ;;  %v640_v46 = vcombine.high %v1906_v62, %v273_v39  ;;  %v815_v52 = vrot.slane %v807_v10, %v1831_v23 }
  0xad   : > { %v623_v53 = vcombine.low %v1908_v26, %v271_v40  ;;  %1433 = vrot.lane.b32.xlu1 %v1432_v29, %s1591_s21  ;;  %1428 = vrot.lane.b32.xlu0 %v1427_v34, %s1592_s24  ;;  %v624_v56 = vcombine.high %v1908_v26, %v271_v40  ;;  %v671_v7 = vcombine.low %v1950_v43, %v1947_v20 }
  0xae   : > { %v647_v57 = vrot.slane %v639_v51, %v1710_v8  ;;  %v654_v27 = vrot.slane %v640_v46, %v1710_v8 }
  0xaf   : > { %v631_v60 = vrot.slane %v623_v53, %v1710_v8  ;;  %v298_v13 = vpop.permute.xlu1 %297  ;;  %v638_v28 = vrot.slane %v624_v56, %v1710_v8  ;;  %v679_v42 = vrot.slane %v671_v7, %v1831_v23 }
  0xb0   : > { %v296_v14 = vpop.permute.xlu0 %295 }
  0xb1   : > { %v687_v0 = vcombine.low %v631_v60, %v647_v57  ;;  %1438 = vrot.lane.b32.xlu1 %v1437_v44, %s1594_s27  ;;  %v688_v33 = vcombine.high %v631_v60, %v647_v57  ;;  %v703_v49 = vcombine.low %v638_v28, %v654_v27  ;;  %v670_v57 = vrot.slane %v656_v36, %v1831_v23 }
  0xb3   : > { %v1932_v18 = vrot.slane %v687_v0, %v1831_v23  ;;  %v302_v61 = vpop.permute.xlu1 %301  ;;  %v702_v53 = vrot.slane %v688_v33, %v1831_v23 }
  0xb4   : > { %v300_v21 = vpop.permute.xlu0 %299  ;;  %v775_v24 = vcombine.low %v298_v13, %v302_v61  ;;  %v776_v25 = vcombine.high %v298_v13, %v302_v61 }
  0xb5   : > { %v719_v22 = vcombine.low %v1929_v17, %v1932_v18  ;;  %v759_v63 = vcombine.low %v296_v14, %v300_v21  ;;  %v760_v1 = vcombine.high %v296_v14, %v300_v21  ;;  %1443 = vrot.lane.b32.xlu1 %v1442_v48, %s1595_s28  ;;  %v806_v48 = vrot.slane %v792_v9, %v1831_v23 }
  0xb6   : > { %v783_v58 = vrot.slane %v775_v24, %v1710_v8  ;;  %v790_v45 = vrot.slane %v776_v25, %v1710_v8  ;;  %v720_v37 = vcombine.high %v1929_v17, %v1932_v18  ;;  %v711_v14 = vrot.slane %v703_v49, %v1831_v23 }
  0xb7   : > { %v767_v19 = vrot.slane %v759_v63, %v1710_v8  ;;  %v774_v47 = vrot.slane %v760_v1, %v1710_v8  ;;  %v310_v62 = vpop.permute.xlu1 %309  ;;  %v721_v46 = vcombine.low %v670_v57, %v702_v53 }
  0xb8   : > { %v308_v26 = vpop.permute.xlu0 %307  ;;  %v724_v1 = vcombine.high %v679_v42, %v711_v14 }
  0xb9   : > { %v823_v29 = vcombine.low %v767_v19, %v783_v58  ;;  %v824_v30 = vcombine.high %v767_v19, %v783_v58  ;;  %1448 = vrot.lane.b32.xlu1 %v1447_v54, %s1596_s29  ;;  %v839_v35 = vcombine.low %v774_v47, %v790_v45  ;;  %v840_v25 = vcombine.high %v774_v47, %v790_v45 }
  0xba   : > { %v704_v19 = vcombine.high %v638_v28, %v654_v27  ;;  %v822_v45 = vrot.slane %v808_v11, %v1831_v23  ;;  %v672_v47 = vcombine.high %v1950_v43, %v1947_v20  ;;  %v1597_v28 = vmov 0.0  }
  0xbb   : > { %v1963_v34 = vrot.slane %v823_v29, %v1831_v23  ;;  %v838_v39 = vrot.slane %v824_v30, %v1831_v23  ;;  %v314_v40 = vpop.permute.xlu1 %313  ;;  %v847_v2 = vrot.slane %v839_v35, %v1831_v23  ;;  %v722_v29 = vcombine.high %v670_v57, %v702_v53  ;;  %1322 = vmatprep.mubr.msk.f32.mxu0 %vm1598_vm2, %v1597_v28  ;;  %v1114_v53 = vld [vmem:[%s2144_s2] sm:$0xff] }
  0xbc   : > { %v312_v44 = vpop.permute.xlu0 %311  ;;  %v879_v50 = vcombine.low %v310_v62, %v314_v40  ;;  %v880_v56 = vcombine.high %v310_v62, %v314_v40  ;;  %v854_v33 = vrot.slane %v840_v25, %v1831_v23  ;;  %v686_v6 = vrot.slane %v672_v47, %v1831_v23 }
  0xbd   : > { %v863_v51 = vcombine.low %v308_v26, %v312_v44  ;;  %v856_v38 = vcombine.high %v1960_v4, %v1963_v34  ;;  %v855_v54 = vcombine.low %v1960_v4, %v1963_v34  ;;  %v857_v13 = vcombine.low %v806_v48, %v838_v39 }
  0xbe   : > { %v887_v5 = vrot.slane %v879_v50, %v1710_v8  ;;  %v864_v61 = vcombine.high %v308_v26, %v312_v44  ;;  %v860_v24 = vcombine.high %v815_v52, %v847_v2  ;;  %v858_v63 = vcombine.high %v806_v48, %v838_v39 }
  0xbf   : > { %v871_v9 = vrot.slane %v863_v51, %v1710_v8  ;;  %v1452_v60 = vpack.i.bf16 %v856_v38, %v720_v37  ;;  %v1457_v10 = vpack.i.bf16 %v857_v13, %v721_v46  ;;  %v894_v30 = vrot.slane %v880_v56, %v1710_v8 }
  0xc0   : > { %v878_v62 = vrot.slane %v864_v61, %v1710_v8  ;;  %v1472_v26 = vpack.i.bf16 %v860_v24, %v724_v1  ;;  %v1462_v35 = vpack.i.bf16 %v858_v63, %v722_v29  ;;  %v859_v27 = vcombine.low %v815_v52, %v847_v2 }
  0xc1   : > { %v895_v0 = vcombine.low %v871_v9, %v887_v5  ;;  %v896_v55 = vcombine.high %v871_v9, %v887_v5  ;;  %1453 = vrot.lane.b32.xlu0 %v1452_v60, %s1590_s20  ;;  %v718_v8 = vrot.slane %v704_v19, %v1831_v23  ;;  %v723_v39 = vcombine.low %v679_v42, %v711_v14 }
  0xc2   : > { %v911_v3 = vcombine.low %v878_v62, %v894_v30  ;;  %v861_v20 = vcombine.low %v822_v45, %v854_v33  ;;  %v912_v40 = vcombine.high %v878_v62, %v894_v30  ;;  %v862_v7 = vcombine.high %v822_v45, %v854_v33 }
  0xc3   : > { %v910_v21 = vrot.slane %v896_v55, %v1831_v23  ;;  %v1995_v58 = vrot.slane %v895_v0, %v1831_v23  ;;  %v1467_v11 = vpack.i.bf16 %v859_v27, %v723_v39  ;;  %v725_v43 = vcombine.low %v686_v6, %v718_v8 }
  0xc4   : > { %v919_v44 = vrot.slane %v911_v3, %v1831_v23  ;;  %v726_v49 = vcombine.high %v686_v6, %v718_v8  ;;  %v926_v50 = vrot.slane %v912_v40, %v1831_v23  ;;  %v1599_v38 = vmov 0  }
  0xc5   : > { %964 = vrot.lane.b32.xlu1 %v910_v21, %s1589_s16  ;;  %1458 = vrot.lane.b32.xlu0 %v1457_v10, %s1589_s16  ;;  %v927_v36 = vcombine.high %v1995_v58, %v1597_v28  ;;  %v1477_v48 = vpack.i.bf16 %v861_v20, %v725_v43  ;;  %v928_v37 = vcombine.high %v910_v21, %v1597_v28  ;;  %s1215_s16 = sshll.u32 %s187_s15, 4  ;;  %s2091_s16 = int_to_ptr.vmem [resolvable:$true] %s1215_s16 }
  0xc6   : > { %v1482_v51 = vpack.i.bf16 %v862_v7, %v726_v49  ;;  %1487 = vset.pattern.permute.xlu1 %v1599_v38  ;;  %1488 = vset.pattern.permute.xlu0 %v1599_v38  ;;  %v929_v23 = vcombine.high %v919_v44, %v1597_v28  ;;  %v930_v2 = vcombine.high %v926_v50, %v1597_v28 }
  0xc9   : > { %1473 = vrot.lane.b32.xlu1 %v1472_v26, %s1594_s27  ;;  %1463 = vrot.lane.b32.xlu0 %v1462_v35, %s1592_s24 }
  0xcd   : > { %944 = vrot.lane.b32.xlu1 %v927_v36, %s1590_s20  ;;  %1468 = vrot.lane.b32.xlu0 %v1467_v11, %s1591_s21 }
  0xd1   : > { %1004 = vrot.lane.b32.xlu1 %v919_v44, %s1591_s21  ;;  %1478 = vrot.lane.b32.xlu0 %v1477_v48, %s1595_s28 }
  0xd5   : > { %1044 = vrot.lane.b32.xlu1 %v926_v50, %s1595_s28  ;;  %1483 = vrot.lane.b32.xlu0 %v1482_v51, %s1596_s29  ;;  %s1489_s28 = scalar_lea.vmem %s2091_s16, 128 }
  0xd6   : > { %p1490_p13 = scmp.ne.s32.totalorder %s2091_s16, %s1489_s28 }
  0xd8   : > { %p1491_p0 = pnand %p1490_p13, %p1672_p3 }
  0xd9   : > { %1117 = vperm.xlu1 %1487, %v1114_v53   ;;  %984 = vrot.lane.b32.xlu0 %v928_v37, %s1592_s24  ;;  %s2089_s24 = scalar_lea.hbm %s2145_s3, %s1302_s11 }
  0xda   : > { %p1492_p1 = pneg %p1491_p0 }
  0xdd   : > { %1024 = vrot.lane.b32.xlu0 %v929_v23, %s1594_s27  ;;  %s1200_s27 = scalar_lea.sflag [#allocation3], %s185_s9 }
  0xe1   : > { %1064 = vrot.lane.b32.xlu0 %v930_v2, %s1596_s29  ;;  %s1493_s29 = sshll.u32 %s1600_s5, 4  ;;  %s1494_s29 = int_to_ptr.vmem [resolvable:$false] %s1493_s29 }
  0xe2   : > { %s1495_s4 = scalar_lea.vmem %s1494_s29, 256  ;;  %p1496_p2 = scmp.lt.s32.totalorder %s2091_s16, %s1494_s29 }
  0xe3   : > { %p1497_p4 = scmp.lt.s32.totalorder %s1495_s4, %s1489_s28 }
  0xe5   : > { %p1498_p5 = por %p1497_p4, %p1496_p2 }
  0xe7   : > { %p1499_p6 = pnand %p1498_p5, %p1492_p1 }
 0x11b   : > { %v1424_v5 = vpop.permute.xlu1 %1423  ;;  %v1419_v9 = vpop.permute.xlu0 %1418 }
 0x11c   : > { %v1421_v57 = vunpack.i.h.bf16 %v1419_v9  ;;  %v1420_v60 = vunpack.i.l.bf16 %v1419_v9  ;;  %v1426_v14 = vunpack.i.h.bf16 %v1424_v5  ;;  %v1425_v0 = vunpack.i.l.bf16 %v1424_v5 }
 0x11e   : > { %v1072_v42 = vsel %vm1071_vm3, %v447_v41, %v1420_v60  ;;  %v1073_v46 = vsel %vm1071_vm3, %v583_v59, %v1421_v57 }
 0x11f   : > { %v1434_v52 = vpop.permute.xlu1 %1433  ;;  %v1429_v13 = vpop.permute.xlu0 %1428  ;;  %v1078_v25 = vsel %vm1077_vm4, %v1072_v42, %v1425_v0  ;;  %v1079_v10 = vsel %vm1077_vm4, %v1073_v46, %v1426_v14 }
 0x120   : > { %v1431_v56 = vunpack.i.h.bf16 %v1429_v13  ;;  %v1430_v61 = vunpack.i.l.bf16 %v1429_v13  ;;  %v1436_v21 = vunpack.i.h.bf16 %v1434_v52  ;;  %v1435_v24 = vunpack.i.l.bf16 %v1434_v52 }
 0x122   : > { %v1084_v31 = vsel %vm1083_vm5, %v1078_v25, %v1430_v61  ;;  %v1085_v32 = vsel %vm1083_vm5, %v1079_v10, %v1431_v56 }
 0x123   : > { %v1439_v55 = vpop.permute.xlu1 %1438  ;;  %v1090_v59 = vsel %vm1089_vm6, %v1084_v31, %v1435_v24  ;;  %v1091_v19 = vsel %vm1089_vm6, %v1085_v32, %v1436_v21 }
 0x124   : > { %v1441_v41 = vunpack.i.h.bf16 %v1439_v55  ;;  %v1440_v1 = vunpack.i.l.bf16 %v1439_v55 }
 0x126   : > { %v1096_v30 = vsel %vm1095_vm7, %v1090_v59, %v1440_v1  ;;  %v1097_v62 = vsel %vm1095_vm7, %v1091_v19, %v1441_v41 }
 0x127   : > { %v1444_v63 = vpop.permute.xlu1 %1443 }
 0x128   : > { %v1446_v15 = vunpack.i.h.bf16 %v1444_v63  ;;  %v1445_v16 = vunpack.i.l.bf16 %v1444_v63 }
 0x12a   : > { %v1102_v47 = vsel %vm1101_vm8, %v1096_v30, %v1445_v16  ;;  %v1103_v33 = vsel %vm1101_vm8, %v1097_v62, %v1446_v15  ;;  %v1113_v15 = vld [vmem:[%s2143_s1] sm:$0xff] }
 0x12b   : > { %v1449_v29 = vpop.permute.xlu1 %1448 }
 0x12c   : > { %v1451_v26 = vunpack.i.h.bf16 %v1449_v29  ;;  %v1450_v45 = vunpack.i.l.bf16 %v1449_v29 }
 0x12e   : > { %v1108_v35 = vsel %vm1107_vm9, %v1102_v47, %v1450_v45  ;;  %v1109_v27 = vsel %vm1107_vm9, %v1103_v33, %v1451_v26 }
 0x12f   : > { %v1326_v36 = vpack.c.bf16 %v1109_v27, %v1108_v35 }
 0x131   : > { %1327 = vmatpush3.bf16.msra.mxu0 %v1326_v36 }
 0x132   : > { %1328 = vmatprep.subr.bf16.mxu0 %v1593_v12 }
 0x133   : > { %v1454_v8 = vpop.permute.xlu0 %1453 }
 0x134   : > { %v1456_v11 = vunpack.i.h.bf16 %v1454_v8  ;;  %v1455_v20 = vunpack.i.l.bf16 %v1454_v8 }
 0x136   : > { %v1075_v53 = vsel %vm1071_vm3, %v855_v54, %v1456_v11  ;;  %v1074_v12 = vsel %vm1071_vm3, %v719_v22, %v1455_v20 }
 0x137   : > { %v1459_v39 = vpop.permute.xlu0 %1458  ;;  %v965_v3 = vpop.permute.xlu1 %964 }
 0x138   : > { %v1461_v40 = vunpack.i.h.bf16 %v1459_v39  ;;  %v1460_v44 = vunpack.i.l.bf16 %v1459_v39 }
 0x13a   : > { %v1080_v37 = vsel %vm1077_vm4, %v1074_v12, %v1460_v44  ;;  %v1081_v38 = vsel %vm1077_vm4, %v1075_v53, %v1461_v40 }
 0x13b   : > { %v1464_v6 = vpop.permute.xlu0 %1463  ;;  %v1474_v43 = vpop.permute.xlu1 %1473 }
 0x13c   : > { %v1466_v7 = vunpack.i.h.bf16 %v1464_v6  ;;  %v1465_v49 = vunpack.i.l.bf16 %v1464_v6  ;;  %v1476_v57 = vunpack.i.h.bf16 %v1474_v43  ;;  %v1475_v17 = vunpack.i.l.bf16 %v1474_v43 }
 0x13e   : > { %v1086_v2 = vsel %vm1083_vm5, %v1080_v37, %v1465_v49  ;;  %v1087_v5 = vsel %vm1083_vm5, %v1081_v38, %v1466_v7 }
 0x13f   : > { %v1469_v48 = vpop.permute.xlu0 %1468  ;;  %v945_v9 = vpop.permute.xlu1 %944 }
 0x140   : > { %v1471_v50 = vunpack.i.h.bf16 %v1469_v48  ;;  %v1470_v51 = vunpack.i.l.bf16 %v1469_v48  ;;  %v1076_v18 = vsel %vm1071_vm3, %v1995_v58, %v945_v9 }
 0x141   : > { %v1082_v61 = vsel %vm1077_vm4, %v1076_v18, %v965_v3 }
 0x142   : > { %v1092_v52 = vsel %vm1089_vm6, %v1086_v2, %v1470_v51  ;;  %v1093_v4 = vsel %vm1089_vm6, %v1087_v5, %v1471_v50 }
 0x143   : > { %v1479_v23 = vpop.permute.xlu0 %1478  ;;  %v1098_v60 = vsel %vm1095_vm7, %v1092_v52, %v1475_v17  ;;  %v1099_v13 = vsel %vm1095_vm7, %v1093_v4, %v1476_v57  ;;  %v1005_v58 = vpop.permute.xlu1 %1004 }
 0x144   : > { %v1481_v34 = vunpack.i.h.bf16 %v1479_v23  ;;  %v1480_v54 = vunpack.i.l.bf16 %v1479_v23 }
 0x146   : > { %v1104_v55 = vsel %vm1101_vm8, %v1098_v60, %v1480_v54  ;;  %v1105_v42 = vsel %vm1101_vm8, %v1099_v13, %v1481_v34 }
 0x147   : > { %v1484_v22 = vpop.permute.xlu0 %1483  ;;  %v1045_v32 = vpop.permute.xlu1 %1044 }
 0x148   : > { %v1486_v14 = vunpack.i.h.bf16 %v1484_v22  ;;  %v1485_v0 = vunpack.i.l.bf16 %v1484_v22 }
 0x14a   : > { %v1110_v46 = vsel %vm1107_vm9, %v1104_v55, %v1485_v0  ;;  %v1111_v56 = vsel %vm1107_vm9, %v1105_v42, %v1486_v14 }
 0x14b   : > { %v985_v21 = vpop.permute.xlu0 %984  ;;  %v1329_v24 = vpack.c.bf16 %v1111_v56, %v1110_v46 }
 0x14c   : > { %v1088_v25 = vsel %vm1083_vm5, %v1082_v61, %v985_v21 }
 0x14d   : > { %1330 = vmatpush3.bf16.msra.mxu0 %v1329_v24  ;;  %v1094_v10 = vsel %vm1089_vm6, %v1088_v25, %v1005_v58 }
 0x14e   : > { %1320 = vmatprep.subr.mxu0 %v1597_v28 }
 0x14f   : > { %v1025_v63 = vpop.permute.xlu0 %1024 }
 0x150   : > { %v1100_v31 = vsel %vm1095_vm7, %v1094_v10, %v1025_v63 }
 0x151   : > { %v1106_v41 = vsel %vm1101_vm8, %v1100_v31, %v1045_v32 }
 0x153   : > { %v1065_v1 = vpop.permute.xlu0 %1064 }
 0x154   : > { %v1112_v16 = vsel %vm1107_vm9, %v1106_v41, %v1065_v1 }
 0x155   : > { %1321 = vmatpush3.msk.msra.mxu0 %vm1124_vm10, %v1112_v16 }
 0x156   : > { %1323 = vmatmul.mubr.msk.f32.vlgmr.msra.gmra.mrb[0].mxu0 %vm1120_vm11, %v1113_v15 }
 0x158   : > { %v1118_v28 = vpop.permute.xlu1 %1117 }
 0x229   : > { %v1194_v59 = vpop.f32.mrb[0].mxu0 }
 0x22a   : > { %v1195_v19 = vadd.f32 %v1194_v59, %v1118_v28  ;;  %v1324_v29 = vpop.f32.mrb[1].mxu0 }
 0x22c   : > { %1198 = vst [vmem:[%s187_s15] sm:$0xff] %v1195_v19 }
 0x22d   : > { %1502 = shalt.err (!%p1499_p6)
}
 0x22e   : > { %s1503_s6 = scalar_lea.hbm %s2089_s24, 128  ;;  %s1507_s9 = scalar_lea.hbm %s2145_s3, 512 }
 0x22f   : > { %p1504_p7 = scmp.ne.s32.totalorder %s2089_s24, %s1503_s6  ;;  %p1508_p11 = scmp.lt.u32.totalorder %s2089_s24, %s2145_s3 }
 0x230   : > { %p1509_p12 = scmp.lt.u32.totalorder %s1507_s9, %s1503_s6  ;;  %p1511_p0 = scmp.lt.u32.totalorder %s1503_s6, %s2089_s24 }
 0x231   : > { %p1505_p9 = pnand %p1504_p7, %p1672_p3 }
 0x232   : > { %p1510_p13 = por %p1509_p12, %p1508_p11 }
 0x233   : > { %p1506_p10 = pneg %p1505_p9 }
 0x234   : > { %p1512_p1 = por %p1511_p0, %p1510_p13 }
 0x236   : > { %p1513_p2 = pnand %p1512_p1, %p1506_p10 }
 0x238   : > { %1516 = shalt.err (!%p1513_p2)
}
 0x239   : > { %1331 = dma.vmem_to_hbm [thread:$0]  (%p1672_p3), %s2091_s16, 128, %s2089_s24, %s1200_s27  }
 0x23a PF: > { %p1337_p4 = scmp.ge.s32.totalorder %s1583_s19, 2  ;;  %s1227_s15 = sand.u32 1, %s1555_s12  }
 0x23b   : > { %s1228_s20 = scalar_lea.sflag [#allocation3], %s1227_s15 }
 0x23c   : > { %p1334_p5 = pnand %p1337_p4, %p1681_p8 }
 0x23e   : > { %1550 = dma.done.wait (!%p1334_p5), %s1228_s20, 128  }
 0x23f   : > { %1552 = vsyncadd (!%p1334_p5), %s1228_s20, 4294967168  ;;  %s16_s19 = sadd.s32 1, %s1583_s19   ;;  %s2148_s12 = smov %s1559_s13 }
 0x240   : > { %p13_p6 = scmp.ge.s32.totalorder %s16_s19, 6   ;;  %s2149_s13 = smov %s1563_s14 }
 0x241   : > { %s2150_s14 = smov %s1690_s30  ;;  %s2151_s15 = smov %s1575_s17 }
 0x242   : > { %s2152_s16 = smov %s1579_s18  ;;  %s2153_s17 = smov %s2156_s22 }
 0x243   : > { %s2154_s18 = smov %s2160_s23  ;;  %15 = sbr.rel (!%p13_p6) target bundleno = 5 (0x5), region = 67 }
 0x24a   :  { %1233 = vsyncpa [#allocation3], 1 }
 0x24b   :  { %1235 = vsyncpa [#allocation3 + $0x1], 1 }

</bundles_post_ra>
